<compile_context>
chip_gen: v7x
topology: tpu7x:2x2x1
jax: 0.10.0
libtpu: 0.0.40
codegen_flags: <defaults>
</compile_context>

<pallas_src>
import functools

import numpy as np

import jax
import jax.numpy as jnp
from jax import lax
from jax.experimental import pallas as pl
from jax.experimental.pallas import tpu as pltpu


def _round_up(x, m):
    return (x + m - 1) // m * m


# ----------------------------------------------------------------------------
# Pallas kernel: fused (M,K)@(K,N) + per-channel bias + activation.
# ----------------------------------------------------------------------------
def _mm_bias_act_kernel(x_ref, w_ref, b_ref, o_ref, *, act):
    acc = jnp.dot(x_ref[...], w_ref[...], preferred_element_type=jnp.float32)
    acc = acc + b_ref[...]                      # (1, N) broadcasts over (tm, N)
    if act == "relu":
        acc = jnp.maximum(acc, 0.0)
    o_ref[...] = acc.astype(o_ref.dtype)


def matmul_bias_act(x, w, b, *, act, out_dtype, tm=512):
    """x:(M,K) bf16, w:(K,N) bf16, b:(1,N) f32  ->  (M,N) out_dtype."""
    M, K = x.shape
    K2, N = w.shape
    assert K == K2
    if M <= 2 * tm:
        # Small layer: one full block, no grid overhead.
        tm_eff, num_tiles = _round_up(max(M, 1), 16), 1
    else:
        # Large layer: tile M; parallel grid lets multiple TCs share the work.
        tm_eff, num_tiles = tm, pl.cdiv(M, tm)
    Mp = tm_eff * num_tiles
    if Mp != M:
        # Row-only pad (cheap); K/N are never padded on the host — the
        # full-array BlockSpecs below let Mosaic pad the VMEM tiles internally.
        x = jnp.pad(x, ((0, Mp - M), (0, 0)))

    out = pl.pallas_call(
        functools.partial(_mm_bias_act_kernel, act=act),
        out_shape=jax.ShapeDtypeStruct((Mp, N), out_dtype),
        grid=(num_tiles,),
        in_specs=[
            pl.BlockSpec((tm_eff, K), lambda i: (i, 0)),
            pl.BlockSpec((K, N), lambda i: (0, 0)),    # same block every step -> no re-DMA
            pl.BlockSpec((1, N), lambda i: (0, 0)),
        ],
        out_specs=pl.BlockSpec((tm_eff, N), lambda i: (i, 0)),
        compiler_params=pltpu.CompilerParams(dimension_semantics=("parallel",)),
    )(x, w, b)
    return out[:M] if Mp != M else out


# ----------------------------------------------------------------------------
# Conv2d = im2col (layout glue) + fused Pallas matmul.  BatchNorm (eval mode)
# is folded into (w, b) at parameter-prep time; ReLU is fused in the kernel.
# ----------------------------------------------------------------------------
def _im2col(x, kh, kw, stride, ph, pw):
    if ph or pw:
        x = jnp.pad(x, ((0, 0), (ph, ph), (pw, pw), (0, 0)))
    n, h, w, c = x.shape
    oh = (h - kh) // stride + 1
    ow = (w - kw) // stride + 1
    cols = []
    for i in range(kh):
        for j in range(kw):
            cols.append(x[:, i:i + stride * oh:stride, j:j + stride * ow:stride, :])
    patches = jnp.concatenate(cols, axis=-1)    # (n, oh, ow, kh*kw*c), (kh,kw,c) order
    return patches.reshape(n * oh * ow, kh * kw * c), oh, ow


def conv_bn_relu(x, p, act="relu"):
    n, h, w, c = x.shape
    kh, kw, s, (ph, pw) = p["kh"], p["kw"], p["stride"], p["pad"]
    if kh == 1 and kw == 1 and s == 1 and ph == 0 and pw == 0:
        patches, oh, ow = x.reshape(n * h * w, c), h, w
    else:
        patches, oh, ow = _im2col(x, kh, kw, s, ph, pw)
    cout = p["w"].shape[1]
    out = matmul_bias_act(patches, p["w"], p["b"], act=act, out_dtype=jnp.bfloat16)
    return out.reshape(n, oh, ow, cout)


def conv1x1_fused(x, fp):
    """Several 1x1 convs over the same input fused into one wide matmul."""
    n, h, w, c = x.shape
    y = matmul_bias_act(x.reshape(n * h * w, c), fp["w"], fp["b"],
                        act="relu", out_dtype=jnp.bfloat16)
    outs, s = [], 0
    for nout in fp["splits"]:
        outs.append(y[:, s:s + nout].reshape(n, h, w, nout))
        s += nout
    return outs


def max_pool(x, k=3, s=2):
    return lax.reduce_window(x, jnp.array(-jnp.inf, x.dtype), lax.max,
                             (1, k, k, 1), (1, s, s, 1), "VALID")


def avg_pool(x, k, s, pad):
    # PyTorch F.avg_pool2d default: count_include_pad=True  ->  divide by k*k.
    acc = lax.reduce_window(x.astype(jnp.float32), 0.0, lax.add,
                            (1, k, k, 1), (1, s, s, 1),
                            ((0, 0), (pad, pad), (pad, pad), (0, 0)))
    return (acc / float(k * k)).astype(x.dtype)


# ----------------------------------------------------------------------------
# Parameter preparation (done once; weights stored pre-transposed in bf16).
# ----------------------------------------------------------------------------
def _init_conv(rng, cin, cout, ksize, stride=1, padding=0):
    kh, kw = (ksize, ksize) if isinstance(ksize, int) else ksize
    ph, pw = (padding, padding) if isinstance(padding, int) else padding
    fan_in = cin * kh * kw
    # He init; eval-mode BN scale is folded into w, BN shift into b.
    w = rng.normal(0.0, np.sqrt(2.0 / fan_in), size=(kh, kw, cin, cout)).astype(np.float32)
    b = (0.01 * rng.normal(size=(1, cout))).astype(np.float32)
    return {
        "w": jnp.asarray(w.reshape(kh * kw * cin, cout), dtype=jnp.bfloat16),
        "b": jnp.asarray(b),
        "kh": kh, "kw": kw, "stride": stride, "pad": (ph, pw),
    }


def _fuse_1x1(convs):
    # Head fusion: concatenate (K,N_i) weight columns / biases once at init.
    return {
        "w": jnp.concatenate([c["w"] for c in convs], axis=1),
        "b": jnp.concatenate([c["b"] for c in convs], axis=1),
        "splits": tuple(int(c["w"].shape[1]) for c in convs),
    }


def _init_inception_a(rng, cin, pool_features):
    return {
        "fused1x1": _fuse_1x1([_init_conv(rng, cin, 64, 1),     # branch1x1
                               _init_conv(rng, cin, 48, 1),     # branch5x5_1
                               _init_conv(rng, cin, 64, 1)]),   # branch3x3dbl_1
        "b5x5_2": _init_conv(rng, 48, 64, 5, padding=2),
        "b3x3dbl_2": _init_conv(rng, 64, 96, 3, padding=1),
        "b3x3dbl_3": _init_conv(rng, 96, 96, 3, padding=1),
        "bpool": _init_conv(rng, cin, pool_features, 1),
    }


def _inception_a(x, p):
    b1, b5, bd = conv1x1_fused(x, p["fused1x1"])
    b5 = conv_bn_relu(b5, p["b5x5_2"])
    bd = conv_bn_relu(bd, p["b3x3dbl_2"])
    bd = conv_bn_relu(bd, p["b3x3dbl_3"])
    bp = conv_bn_relu(avg_pool(x, 3, 1, 1), p["bpool"])
    return jnp.concatenate([b1, b5, bd, bp], axis=-1)


def _init_inception_b(rng, cin):
    return {
        "b3x3": _init_conv(rng, cin, 384, 3, stride=2),
        "b3x3dbl_1": _init_conv(rng, cin, 64, 1),
        "b3x3dbl_2": _init_conv(rng, 64, 96, 3, padding=1),
        "b3x3dbl_3": _init_conv(rng, 96, 96, 3, stride=2),
    }


def _inception_b(x, p):
    b3 = conv_bn_relu(x, p["b3x3"])
    bd = conv_bn_relu(x, p["b3x3dbl_1"])
    bd = conv_bn_relu(bd, p["b3x3dbl_2"])
    bd = conv_bn_relu(bd, p["b3x3dbl_3"])
    bp = max_pool(x, 3, 2)
    return jnp.concatenate([b3, bd, bp], axis=-1)


def _init_inception_c(rng, cin, c7):
    return {
        "fused1x1": _fuse_1x1([_init_conv(rng, cin, 192, 1),    # branch1x1
                               _init_conv(rng, cin, c7, 1),     # branch7x7_1
                               _init_conv(rng, cin, c7, 1)]),   # branch7x7dbl_1
        "b7x7_2": _init_conv(rng, c7, c7, (1, 7), padding=(0, 3)),
        "b7x7_3": _init_conv(rng, c7, 192, (7, 1), padding=(3, 0)),
        "b7x7dbl_2": _init_conv(rng, c7, c7, (7, 1), padding=(3, 0)),
        "b7x7dbl_3": _init_conv(rng, c7, c7, (1, 7), padding=(0, 3)),
        "b7x7dbl_4": _init_conv(rng, c7, c7, (7, 1), padding=(3, 0)),
        "b7x7dbl_5": _init_conv(rng, c7, 192, (1, 7), padding=(0, 3)),
        "bpool": _init_conv(rng, cin, 192, 1),
    }


def _inception_c(x, p):
    b1, b7, bd = conv1x1_fused(x, p["fused1x1"])
    b7 = conv_bn_relu(b7, p["b7x7_2"])
    b7 = conv_bn_relu(b7, p["b7x7_3"])
    for name in ("b7x7dbl_2", "b7x7dbl_3", "b7x7dbl_4", "b7x7dbl_5"):
        bd = conv_bn_relu(bd, p[name])
    bp = conv_bn_relu(avg_pool(x, 3, 1, 1), p["bpool"])
    return jnp.concatenate([b1, b7, bd, bp], axis=-1)


def _init_inception_d(rng, cin):
    return {
        "fused1x1": _fuse_1x1([_init_conv(rng, cin, 192, 1),    # branch3x3_1
                               _init_conv(rng, cin, 192, 1)]),  # branch7x7x3_1
        "b3x3_2": _init_conv(rng, 192, 320, 3, stride=2),
        "b7x7x3_2": _init_conv(rng, 192, 192, (1, 7), padding=(0, 3)),
        "b7x7x3_3": _init_conv(rng, 192, 192, (7, 1), padding=(3, 0)),
        "b7x7x3_4": _init_conv(rng, 192, 192, 3, stride=2),
    }


def _inception_d(x, p):
    b3, b7 = conv1x1_fused(x, p["fused1x1"])
    b3 = conv_bn_relu(b3, p["b3x3_2"])
    b7 = conv_bn_relu(b7, p["b7x7x3_2"])
    b7 = conv_bn_relu(b7, p["b7x7x3_3"])
    b7 = conv_bn_relu(b7, p["b7x7x3_4"])
    bp = max_pool(x, 3, 2)
    return jnp.concatenate([b3, b7, bp], axis=-1)


def _init_inception_e(rng, cin):
    return {
        "fused1x1": _fuse_1x1([_init_conv(rng, cin, 320, 1),    # branch1x1
                               _init_conv(rng, cin, 384, 1),    # branch3x3_1
                               _init_conv(rng, cin, 448, 1)]),  # branch3x3dbl_1
        "b3x3_2a": _init_conv(rng, 384, 384, (1, 3), padding=(0, 1)),
        "b3x3_2b": _init_conv(rng, 384, 384, (3, 1), padding=(1, 0)),
        "b3x3dbl_2": _init_conv(rng, 448, 384, 3, padding=1),
        "b3x3dbl_3a": _init_conv(rng, 384, 384, (1, 3), padding=(0, 1)),
        "b3x3dbl_3b": _init_conv(rng, 384, 384, (3, 1), padding=(1, 0)),
        "bpool": _init_conv(rng, cin, 192, 1),
    }


def _inception_e(x, p):
    b1, b3, bd = conv1x1_fused(x, p["fused1x1"])
    b3 = jnp.concatenate([conv_bn_relu(b3, p["b3x3_2a"]),
                          conv_bn_relu(b3, p["b3x3_2b"])], axis=-1)
    bd = conv_bn_relu(bd, p["b3x3dbl_2"])
    bd = jnp.concatenate([conv_bn_relu(bd, p["b3x3dbl_3a"]),
                          conv_bn_relu(bd, p["b3x3dbl_3b"])], axis=-1)
    bp = conv_bn_relu(avg_pool(x, 3, 1, 1), p["bpool"])
    return jnp.concatenate([b1, b3, bd, bp], axis=-1)


def init_params(seed=0, nef=256):
    rng = np.random.default_rng(seed)
    return {
        "Conv2d_1a_3x3": _init_conv(rng, 3, 32, 3, stride=2),
        "Conv2d_2a_3x3": _init_conv(rng, 32, 32, 3),
        "Conv2d_2b_3x3": _init_conv(rng, 32, 64, 3, padding=1),
        "Conv2d_3b_1x1": _init_conv(rng, 64, 80, 1),
        "Conv2d_4a_3x3": _init_conv(rng, 80, 192, 3),
        "Mixed_5b": _init_inception_a(rng, 192, 32),
        "Mixed_5c": _init_inception_a(rng, 256, 64),
        "Mixed_5d": _init_inception_a(rng, 288, 64),
        "Mixed_6a": _init_inception_b(rng, 288),
        "Mixed_6b": _init_inception_c(rng, 768, 128),
        "Mixed_6c": _init_inception_c(rng, 768, 160),
        "Mixed_6d": _init_inception_c(rng, 768, 160),
        "Mixed_6e": _init_inception_c(rng, 768, 192),
        "Mixed_7a": _init_inception_d(rng, 768),
        "Mixed_7b": _init_inception_e(rng, 1280),
        "Mixed_7c": _init_inception_e(rng, 2048),
        # Trainable heads of CNN_ENCODER (uniform(-0.1, 0.1) as in PyTorch).
        "emb_features_w": jnp.asarray(
            rng.uniform(-0.1, 0.1, size=(768, nef)).astype(np.float32),
            dtype=jnp.bfloat16),                                  # conv1x1(768, nef), bias=False
        "emb_cnn_code_w": jnp.asarray(
            rng.uniform(-0.1, 0.1, size=(2048, nef)).astype(np.float32),
            dtype=jnp.bfloat16),                                  # Linear(2048, nef)
        "emb_cnn_code_b": jnp.asarray(
            rng.uniform(-0.02, 0.02, size=(1, nef)).astype(np.float32)),
    }


# ----------------------------------------------------------------------------
# CNN_ENCODER forward.
# ----------------------------------------------------------------------------
def cnn_encoder_forward(x_nchw, params, nef=256):
    # NCHW -> NHWC; bilinear upsample to 299x299 (layout/resize glue).
    x = jnp.transpose(x_nchw, (0, 2, 3, 1)).astype(jnp.float32)
    n = x.shape[0]
    x = jax.image.resize(x, (n, 299, 299, x.shape[-1]), method="bilinear")
    x = x.astype(jnp.bfloat16)

    x = conv_bn_relu(x, params["Conv2d_1a_3x3"])      # 149x149x32
    x = conv_bn_relu(x, params["Conv2d_2a_3x3"])      # 147x147x32
    x = conv_bn_relu(x, params["Conv2d_2b_3x3"])      # 147x147x64
    x = max_pool(x, 3, 2)                             # 73x73x64
    x = conv_bn_relu(x, params["Conv2d_3b_1x1"])      # 73x73x80
    x = conv_bn_relu(x, params["Conv2d_4a_3x3"])      # 71x71x192
    x = max_pool(x, 3, 2)                             # 35x35x192
    x = _inception_a(x, params["Mixed_5b"])           # 35x35x256
    x = _inception_a(x, params["Mixed_5c"])           # 35x35x288
    x = _inception_a(x, params["Mixed_5d"])           # 35x35x288
    x = _inception_b(x, params["Mixed_6a"])           # 17x17x768
    x = _inception_c(x, params["Mixed_6b"])
    x = _inception_c(x, params["Mixed_6c"])
    x = _inception_c(x, params["Mixed_6d"])
    x = _inception_c(x, params["Mixed_6e"])           # 17x17x768
    features = x                                      # region features
    x = _inception_d(x, params["Mixed_7a"])           # 8x8x1280
    x = _inception_e(x, params["Mixed_7b"])           # 8x8x2048
    x = _inception_e(x, params["Mixed_7c"])           # 8x8x2048
    x = avg_pool(x, 8, 8, 0)                          # 1x1x2048
    x = x.reshape(n, 2048)

    # emb_cnn_code: Linear(2048 -> nef)  (fused Pallas matmul + bias, no act)
    cnn_code = matmul_bias_act(x, params["emb_cnn_code_w"],
                               params["emb_cnn_code_b"],
                               act="none", out_dtype=jnp.float32)

    # emb_features: conv1x1(768 -> nef, bias=False) on the 17x17 feature map
    fh, fw = features.shape[1], features.shape[2]
    zero_b = jnp.zeros((1, nef), jnp.float32)
    feat = matmul_bias_act(features.reshape(n * fh * fw, 768),
                           params["emb_features_w"], zero_b,
                           act="none", out_dtype=jnp.float32)
    feat = feat.reshape(n, fh, fw, nef)
    feat = jnp.transpose(feat, (0, 3, 1, 2))          # NCHW to match PyTorch
    return feat, cnn_code


if __name__ == "__main__":
    key = jax.random.PRNGKey(0)
    nef = 256
    # Small input image; forward upsamples to 299x299 like the PyTorch module.
    x = jax.random.normal(key, (2, 3, 64, 64), dtype=jnp.float32)
    params = init_params(seed=0, nef=nef)

    features, cnn_code = cnn_encoder_forward(x, params, nef=nef)
    jax.block_until_ready((features, cnn_code))

    assert features.shape == (2, nef, 17, 17), features.shape
    assert cnn_code.shape == (2, nef), cnn_code.shape
    assert bool(jnp.all(jnp.isfinite(features)))
    assert bool(jnp.all(jnp.isfinite(cnn_code)))
    print("KERNEL_OK")
</pallas_src>

<mosaic_0001>
module attributes {stable_mosaic.version = 11 : i64} {
  func.func @_mm_bias_act_kernel(%arg0: i32, %arg1: memref<512x27xbf16, #tpu.memory_space<vmem>>, %arg2: memref<27x32xbf16, #tpu.memory_space<vmem>>, %arg3: memref<1x32xf32, #tpu.memory_space<vmem>>, %arg4: memref<512x32xbf16, #tpu.memory_space<vmem>>) attributes {dimension_semantics = [#tpu.dimension_semantics<parallel>], iteration_bounds = array<i64: 87>, scalar_prefetch = 0 : i64, scratch_operands = 0 : i64, tpu.core_type = #tpu.core_type<tc>, window_params = [{transform_indices = @transform_0, window_bounds = array<i64: 512, 27>}, {pipeline_mode = #tpu.pipeline_mode<synchronous>, transform_indices = @transform_1, window_bounds = array<i64: 27, 32>}, {pipeline_mode = #tpu.pipeline_mode<synchronous>, transform_indices = @transform_2, window_bounds = array<i64: 1, 32>}, {transform_indices = @transform_3, window_bounds = array<i64: 512, 32>}]} {
    %c0 = arith.constant 0 : index
    %c0_0 = arith.constant 0 : index
    %0 = vector.load %arg1[%c0, %c0_0] : memref<512x27xbf16, #tpu.memory_space<vmem>>, vector<512x27xbf16>
    %c0_1 = arith.constant 0 : index
    %c0_2 = arith.constant 0 : index
    %1 = vector.load %arg2[%c0_1, %c0_2] : memref<27x32xbf16, #tpu.memory_space<vmem>>, vector<27x32xbf16>
    %cst = arith.constant dense<0.000000e+00> : vector<512x32xf32>
    %2 = tpu.matmul %0, %1, %cst {dimension_numbers = #tpu.dot_dimension_numbers<[1], [0], [0], [1], [0, 0, 1, 1], [], []>} : vector<512x27xbf16>, vector<27x32xbf16>, vector<512x32xf32> -> vector<512x32xf32>
    %c0_3 = arith.constant 0 : index
    %c0_4 = arith.constant 0 : index
    %3 = vector.load %arg3[%c0_3, %c0_4] : memref<1x32xf32, #tpu.memory_space<vmem>>, vector<1x32xf32>
    %4 = vector.broadcast %3 : vector<1x32xf32> to vector<512x32xf32>
    %5 = arith.addf %2, %4 : vector<512x32xf32>
    %cst_5 = arith.constant 0.000000e+00 : f32
    %6 = vector.broadcast %cst_5 : f32 to vector<512x32xf32>
    %7 = arith.maximumf %5, %6 : vector<512x32xf32>
    %8 = arith.truncf %7 : vector<512x32xf32> to vector<512x32xbf16>
    %c0_6 = arith.constant 0 : index
    %c0_7 = arith.constant 0 : index
    %9 = vector.load %arg4[%c0_6, %c0_7] : memref<512x32xbf16, #tpu.memory_space<vmem>>, vector<512x32xbf16>
    tpu.vector_store %arg4[%c0_6, %c0_7], %8 {strides = array<i32>} : memref<512x32xbf16, #tpu.memory_space<vmem>>, vector<512x32xbf16>,
    return
  }
  func.func @transform_0(%arg0: i32) -> (i32, i32) {
    %c0_i32 = arith.constant 0 : i32
    %c0_i32_0 = arith.constant 0 : i32
    return %arg0, %c0_i32 : i32, i32
  }
  func.func @transform_1(%arg0: i32) -> (i32, i32) {
    %c0_i32 = arith.constant 0 : i32
    %c0_i32_0 = arith.constant 0 : i32
    %c0_i32_1 = arith.constant 0 : i32
    return %c0_i32, %c0_i32_0 : i32, i32
  }
  func.func @transform_2(%arg0: i32) -> (i32, i32) {
    %c0_i32 = arith.constant 0 : i32
    %c0_i32_0 = arith.constant 0 : i32
    %c0_i32_1 = arith.constant 0 : i32
    return %c0_i32, %c0_i32_0 : i32, i32
  }
  func.func @transform_3(%arg0: i32) -> (i32, i32) {
    %c0_i32 = arith.constant 0 : i32
    %c0_i32_0 = arith.constant 0 : i32
    return %arg0, %c0_i32 : i32, i32
  }
}

</mosaic_0001>

<bundles_post_ra>
// kernel: tpu_custom_call.1
= control target key start
LH: loop header
LB: loop body
LE: loop exit
PB: predicated region body
PF: predicated region fallthrough
CT: control target
= control target key end

     0   :  { %s1639_s12 = smov 0   ;;  %s1934_s0 = inlined_call_operand.vmem [shape: bf16[44544,27], index: 0, kind: input, shape index: {}]   ;;  %s1935_s1 = inlined_call_operand.vmem [shape: bf16[27,32], index: 1, kind: input, shape index: {}]   ;;  %s1936_s2 = inlined_call_operand.vmem [shape: f32[1,32], index: 2, kind: input, shape index: {}]   ;;  %s1937_s3 = inlined_call_operand.vmem [shape: bf16[44544,32], index: 3, kind: output, shape index: {}]  }
   0x1 LB: > { %s1255_s13 = sadd.s32 4294967295, %s1616_s12   ;;  %p1259_p0 = scmp.ge.s32.totalorder %s1616_s12, 1  ;;  %s1616_s12 = sphi %s1639_s12, %s13_s12  }
   0x2   : > { %p138_p1 = scmp.lt.s32.totalorder %s1616_s12, 88 }
   0x4   : > { %p139_p2 = pnand %p1259_p0, %p138_p1 }
   0x5   : > { %v1576_v0 = vld [vmem:[%s1935_s1] sm:$0xff] (!%p139_p2)   ;;  %vm518_vm0 = vcmask (!%p139_p2), 1044480   ;;  %v1577_v1 = vld [vmem:[%s1935_s1 + $0x8] sm:$0x3f] (!%p139_p2)   ;;  %vm519_vm1 = vcmask (!%p139_p2), 1045504   ;;  %s1260_s18 = sshll.u32 (!%p139_p2), %s1255_s13, 6 }
   0x6   : > { %142 = sbr.rel (%p139_p2) target bundleno = 297 (0x129), region = 32  ;;  %1495 = vmatprep.subr.bf16.mxu0 (!%p139_p2), %v1576_v0  ;;  %1563 = vmatprep.subr.bf16.mxu1 (!%p139_p2), %v1576_v0  ;;  %v1618_v2 = vmov (!%p139_p2), 65535   ;;  %p163_p3 = scmp.lt.s32.totalorder (!%p139_p2), %s1260_s18, 5567  ;;  %vm421_vm2 = vcmask (!%p139_p2), 220160   ;;  %v1730_v38 = vld [vmem:[%s1936_s2] ss:$0 sm:$0xff] (!%p139_p2) }
   0x7   : > { %1496 = vmatpush3.bf16.msra.mxu0 (!%p139_p2), %v1576_v0  ;;  %1565 = vmatpush3.bf16.msra.mxu1 (!%p139_p2), %v1576_v0  ;;  %v520_v3 = vsel (!%p139_p2), %vm518_vm0, 4294967295, %v1618_v2  ;;  %vm1134_vm3 = vcmask (!%p139_p2), 257024  }
   0x8   : > { %v521_v4 = vsel (!%p139_p2), %vm519_vm1, %v520_v3, 0 }
   0x9   : > { %v523_v5 = vand.u32 (!%p139_p2), %v1577_v1, %v521_v4 }
   0xb   : > { %1497 = vmatprep.subr.bf16.mxu0 (!%p139_p2), %v523_v5  ;;  %1564 = vmatprep.subr.bf16.mxu1 (!%p139_p2), %v523_v5 }
   0xc   : > { %1498 = vmatpush3.bf16.msra.mxu0 (!%p139_p2), %v523_v5  ;;  %1566 = vmatpush3.bf16.msra.mxu1 (!%p139_p2), %v523_v5 }
   0xd   : > { %s1939_s18 = smov (!%p163_p3, %s1260_s18), 5567 }
   0xe   : > { %s1261_s19 = sshll.u32 %s1939_s18, 2 }
   0xf   : > { %s1661_s22 = scalar_lea.vmem %s1934_s0, %s1261_s19  ;;  %s1742_s27 = scalar_lea.vmem %s1937_s3, %s1261_s19 }
  0x10   : > { %v1578_v6 = vld [vmem:[%s1661_s22] sm:$0xff]   ;;  %v1580_v8 = vld [vmem:[%s1661_s22 + $0x8] sm:$0xff]   ;;  %v1582_v10 = vld [vmem:[%s1661_s22 + $0x10] sm:$0xff]  }
  0x11   : > { %v1579_v7 = vld [vmem:[%s1661_s22 + $0x80] sm:$0xff]   ;;  %1499 = vmatprep.mubr.msk.bf16.mxu0 %vm421_vm2, %v1578_v6  ;;  %v1581_v9 = vld [vmem:[%s1661_s22 + $0x88] sm:$0xff]   ;;  %v1583_v11 = vld [vmem:[%s1661_s22 + $0x90] sm:$0xff]  }
  0x12   : > { %1531 = vmatprep.mubr.msk.bf16.mxu1 %vm421_vm2, %v1579_v7  ;;  %1500 = vmatmul.mubr.msk.bf16.vlgmr.msra.gmra.mrb[0].mxu0 %vm421_vm2, %v1580_v8  ;;  %v1584_v12 = vld [vmem:[%s1661_s22 + $0x18] sm:$0xff]   ;;  %v1586_v14 = vld [vmem:[%s1661_s22 + $0x20] sm:$0xff]   ;;  %v1588_v16 = vld [vmem:[%s1661_s22 + $0x28] sm:$0xff]  }
  0x13   : > { %1532 = vmatmul.mubr.msk.bf16.vlgmr.msra.gmra.mrb[0].mxu1 %vm421_vm2, %v1581_v9  ;;  %1503 = vmatprep.mubr.msk.bf16.mxu0 %vm421_vm2, %v1582_v10  ;;  %v1585_v13 = vld [vmem:[%s1661_s22 + $0x98] sm:$0xff]   ;;  %v1587_v15 = vld [vmem:[%s1661_s22 + $0xa0] sm:$0xff]   ;;  %v1589_v17 = vld [vmem:[%s1661_s22 + $0xa8] sm:$0xff]  }
  0x14   : > { %1535 = vmatprep.mubr.msk.bf16.mxu1 %vm421_vm2, %v1583_v11  ;;  %v1590_v18 = vld [vmem:[%s1661_s22 + $0x30] sm:$0xff]   ;;  %v1592_v20 = vld [vmem:[%s1661_s22 + $0x38] sm:$0xff]   ;;  %v1594_v22 = vld [vmem:[%s1661_s22 + $0x40] sm:$0xff]  }
  0x15   : > { %v1591_v19 = vld [vmem:[%s1661_s22 + $0xb0] sm:$0xff]   ;;  %v1593_v21 = vld [vmem:[%s1661_s22 + $0xb8] sm:$0xff]   ;;  %v1595_v23 = vld [vmem:[%s1661_s22 + $0xc0] sm:$0xff]  }
  0x16   : > { %v1596_v24 = vld [vmem:[%s1661_s22 + $0x48] sm:$0xff]   ;;  %v1598_v26 = vld [vmem:[%s1661_s22 + $0x50] sm:$0xff]   ;;  %v1600_v28 = vld [vmem:[%s1661_s22 + $0x58] sm:$0xff]  }
  0x17   : > { %v1597_v25 = vld [vmem:[%s1661_s22 + $0xc8] sm:$0xff]   ;;  %v1599_v27 = vld [vmem:[%s1661_s22 + $0xd0] sm:$0xff]   ;;  %v1601_v29 = vld [vmem:[%s1661_s22 + $0xd8] sm:$0xff]  }
  0x18   : > { %v1602_v30 = vld [vmem:[%s1661_s22 + $0x60] sm:$0xff]   ;;  %v1604_v32 = vld [vmem:[%s1661_s22 + $0x68] sm:$0xff]   ;;  %v1606_v34 = vld [vmem:[%s1661_s22 + $0x70] sm:$0xff]  }
  0x19   : > { %v1603_v31 = vld [vmem:[%s1661_s22 + $0xe0] sm:$0xff]   ;;  %v1605_v33 = vld [vmem:[%s1661_s22 + $0xe8] sm:$0xff]   ;;  %v1607_v35 = vld [vmem:[%s1661_s22 + $0xf0] sm:$0xff]  }
  0x1a   : > { %1504 = vmatmul.mubr.msk.bf16.gmra.mrb[4].mxu0 %vm421_vm2, %v1584_v12  ;;  %v1608_v36 = vld [vmem:[%s1661_s22 + $0x78] sm:$0xff]  }
  0x1b   : > { %1536 = vmatmul.mubr.msk.bf16.gmra.mrb[4].mxu1 %vm421_vm2, %v1585_v13  ;;  %1507 = vmatprep.mubr.msk.bf16.mxu0 %vm421_vm2, %v1586_v14  ;;  %v1609_v37 = vld [vmem:[%s1661_s22 + $0xf8] sm:$0xff]  }
  0x1c   : > { %1539 = vmatprep.mubr.msk.bf16.mxu1 %vm421_vm2, %v1587_v15 }
  0x22   : > { %1508 = vmatmul.mubr.msk.bf16.gmra.mrb[8].mxu0 %vm421_vm2, %v1588_v16 }
  0x23   : > { %1540 = vmatmul.mubr.msk.bf16.gmra.mrb[8].mxu1 %vm421_vm2, %v1589_v17  ;;  %1511 = vmatprep.mubr.msk.bf16.mxu0 %vm421_vm2, %v1590_v18 }
  0x24   : > { %1543 = vmatprep.mubr.msk.bf16.mxu1 %vm421_vm2, %v1591_v19 }
  0x2a   : > { %1512 = vmatmul.mubr.msk.bf16.gmra.mrb[12].mxu0 %vm421_vm2, %v1592_v20 }
  0x2b   : > { %1544 = vmatmul.mubr.msk.bf16.gmra.mrb[12].mxu1 %vm421_vm2, %v1593_v21  ;;  %1515 = vmatprep.mubr.msk.bf16.mxu0 %vm421_vm2, %v1594_v22 }
  0x2c   : > { %1547 = vmatprep.mubr.msk.bf16.mxu1 %vm421_vm2, %v1595_v23 }
  0x32   : > { %1516 = vmatmul.mubr.msk.bf16.gmra.mrb[16].mxu0 %vm421_vm2, %v1596_v24 }
  0x33   : > { %1548 = vmatmul.mubr.msk.bf16.gmra.mrb[16].mxu1 %vm421_vm2, %v1597_v25  ;;  %1519 = vmatprep.mubr.msk.bf16.mxu0 %vm421_vm2, %v1598_v26 }
  0x34   : > { %1551 = vmatprep.mubr.msk.bf16.mxu1 %vm421_vm2, %v1599_v27 }
  0x3a   : > { %1520 = vmatmul.mubr.msk.bf16.gmra.mrb[20].mxu0 %vm421_vm2, %v1600_v28 }
  0x3b   : > { %1552 = vmatmul.mubr.msk.bf16.gmra.mrb[20].mxu1 %vm421_vm2, %v1601_v29  ;;  %1523 = vmatprep.mubr.msk.bf16.mxu0 %vm421_vm2, %v1602_v30 }
  0x3c   : > { %1555 = vmatprep.mubr.msk.bf16.mxu1 %vm421_vm2, %v1603_v31 }
  0x42   : > { %1524 = vmatmul.mubr.msk.bf16.gmra.mrb[24].mxu0 %vm421_vm2, %v1604_v32 }
  0x43   : > { %1556 = vmatmul.mubr.msk.bf16.gmra.mrb[24].mxu1 %vm421_vm2, %v1605_v33  ;;  %1527 = vmatprep.mubr.msk.bf16.mxu0 %vm421_vm2, %v1606_v34 }
  0x44   : > { %1559 = vmatprep.mubr.msk.bf16.mxu1 %vm421_vm2, %v1607_v35 }
  0x4a   : > { %1528 = vmatmul.mubr.msk.bf16.gmra.mrb[28].mxu0 %vm421_vm2, %v1608_v36 }
  0x4b   : > { %1560 = vmatmul.mubr.msk.bf16.gmra.mrb[28].mxu1 %vm421_vm2, %v1609_v37 }
  0xe5   : > { %v1501_v39 = vpop.f32.mrb[0].mxu0 }
  0xe6   : > { %v568_v40 = vadd.f32 %v1501_v39, %v1730_v38  ;;  %v1533_v41 = vpop.f32.mrb[0].mxu1  ;;  %v559_v42 = vpop.f32.mrb[1].mxu0 }
  0xe7   : > { %v696_v43 = vadd.f32 %v1533_v41, %v1730_v38  ;;  %v560_v44 = vadd.f32 %v1730_v38, %v559_v42  ;;  %v687_v45 = vpop.f32.mrb[1].mxu1  ;;  %v1502_v46 = vpop.f32.mrb[2].mxu0 }
  0xe8   : > { %v816_v47 = vmax.f32 %v568_v40, 0.0  ;;  %v688_v48 = vadd.f32 %v1730_v38, %v687_v45  ;;  %v571_v49 = vadd.f32 %v1502_v46, %v1730_v38  ;;  %v1534_v50 = vpop.f32.mrb[2].mxu1  ;;  %v562_v51 = vpop.f32.mrb[3].mxu0 }
  0xe9   : > { %v848_v52 = vmax.f32 %v696_v43, 0.0  ;;  %v814_v53 = vmax.f32 %v560_v44, 0.0  ;;  %v699_v54 = vadd.f32 %v1534_v50, %v1730_v38  ;;  %v563_v55 = vadd.f32 %v1730_v38, %v562_v51  ;;  %v690_v56 = vpop.f32.mrb[3].mxu1 }
  0xea   : > { %v1399_v57 = vpack.c.bf16 %v816_v47, %v816_v47  ;;  %v846_v58 = vmax.f32 %v688_v48, 0.0  ;;  %v817_v59 = vmax.f32 %v571_v49, 0.0  ;;  %v691_v60 = vadd.f32 %v1730_v38, %v690_v56 }
  0xeb   : > { %v1431_v61 = vpack.c.bf16 %v848_v52, %v848_v52  ;;  %v1397_v62 = vpack.c.bf16 %v814_v53, %v814_v53  ;;  %v849_v63 = vmax.f32 %v699_v54, 0.0  ;;  %v815_v0 = vmax.f32 %v563_v55, 0.0 }
  0xec   : > { %1137 = vst.msk [vmem:[%s1742_s27 + $0x8] sm:$0xf] %vm1134_vm3, %v1399_v57  ;;  %v1429_v1 = vpack.c.bf16 %v846_v58, %v846_v58  ;;  %v1400_v2 = vpack.c.bf16 %v817_v59, %v817_v59  ;;  %v847_v3 = vmax.f32 %v691_v60, 0.0 }
  0xed   : > { %1169 = vst.msk [vmem:[%s1742_s27 + $0x88] sm:$0xf] %vm1134_vm3, %v1431_v61  ;;  %1135 = vst.msk [vmem:[%s1742_s27] sm:$0xf] %vm1134_vm3, %v1397_v62  ;;  %v1432_v4 = vpack.c.bf16 %v849_v63, %v849_v63  ;;  %v1398_v5 = vpack.c.bf16 %v815_v0, %v815_v0  ;;  %v1505_v6 = vpop.f32.mrb[4].mxu0 }
  0xee   : > { %1167 = vst.msk [vmem:[%s1742_s27 + $0x80] sm:$0xf] %vm1134_vm3, %v1429_v1  ;;  %1138 = vst.msk [vmem:[%s1742_s27 + $0xc] sm:$0xf] %vm1134_vm3, %v1400_v2  ;;  %v1430_v7 = vpack.c.bf16 %v847_v3, %v847_v3  ;;  %v584_v8 = vadd.f32 %v1505_v6, %v1730_v38  ;;  %v1537_v9 = vpop.f32.mrb[4].mxu1  ;;  %v575_v10 = vpop.f32.mrb[5].mxu0 }
  0xef   : > { %1170 = vst.msk [vmem:[%s1742_s27 + $0x8c] sm:$0xf] %vm1134_vm3, %v1432_v4  ;;  %1136 = vst.msk [vmem:[%s1742_s27 + $0x4] sm:$0xf] %vm1134_vm3, %v1398_v5  ;;  %v712_v11 = vadd.f32 %v1537_v9, %v1730_v38  ;;  %v576_v12 = vadd.f32 %v1730_v38, %v575_v10  ;;  %v703_v13 = vpop.f32.mrb[5].mxu1  ;;  %v1506_v14 = vpop.f32.mrb[6].mxu0 }
  0xf0   : > { %1168 = vst.msk [vmem:[%s1742_s27 + $0x84] sm:$0xf] %vm1134_vm3, %v1430_v7  ;;  %v820_v15 = vmax.f32 %v584_v8, 0.0  ;;  %v704_v16 = vadd.f32 %v1730_v38, %v703_v13  ;;  %v587_v17 = vadd.f32 %v1506_v14, %v1730_v38  ;;  %v1538_v18 = vpop.f32.mrb[6].mxu1  ;;  %v578_v19 = vpop.f32.mrb[7].mxu0 }
  0xf1   : > { %v852_v20 = vmax.f32 %v712_v11, 0.0  ;;  %v818_v21 = vmax.f32 %v576_v12, 0.0  ;;  %v715_v22 = vadd.f32 %v1538_v18, %v1730_v38  ;;  %v579_v23 = vadd.f32 %v1730_v38, %v578_v19  ;;  %v706_v24 = vpop.f32.mrb[7].mxu1 }
  0xf2   : > { %v1403_v25 = vpack.c.bf16 %v820_v15, %v820_v15  ;;  %v850_v26 = vmax.f32 %v704_v16, 0.0  ;;  %v821_v27 = vmax.f32 %v587_v17, 0.0  ;;  %v707_v28 = vadd.f32 %v1730_v38, %v706_v24 }
  0xf3   : > { %v1435_v29 = vpack.c.bf16 %v852_v20, %v852_v20  ;;  %v1401_v30 = vpack.c.bf16 %v818_v21, %v818_v21  ;;  %v853_v31 = vmax.f32 %v715_v22, 0.0  ;;  %v819_v32 = vmax.f32 %v579_v23, 0.0 }
  0xf4   : > { %1141 = vst.msk [vmem:[%s1742_s27 + $0x18] sm:$0xf] %vm1134_vm3, %v1403_v25  ;;  %v1433_v33 = vpack.c.bf16 %v850_v26, %v850_v26  ;;  %v1404_v34 = vpack.c.bf16 %v821_v27, %v821_v27  ;;  %v851_v35 = vmax.f32 %v707_v28, 0.0 }
  0xf5   : > { %1173 = vst.msk [vmem:[%s1742_s27 + $0x98] sm:$0xf] %vm1134_vm3, %v1435_v29  ;;  %1139 = vst.msk [vmem:[%s1742_s27 + $0x10] sm:$0xf] %vm1134_vm3, %v1401_v30  ;;  %v1436_v36 = vpack.c.bf16 %v853_v31, %v853_v31  ;;  %v1402_v37 = vpack.c.bf16 %v819_v32, %v819_v32  ;;  %v1509_v39 = vpop.f32.mrb[8].mxu0 }
  0xf6   : > { %1171 = vst.msk [vmem:[%s1742_s27 + $0x90] sm:$0xf] %vm1134_vm3, %v1433_v33  ;;  %1142 = vst.msk [vmem:[%s1742_s27 + $0x1c] sm:$0xf] %vm1134_vm3, %v1404_v34  ;;  %v1434_v40 = vpack.c.bf16 %v851_v35, %v851_v35  ;;  %v600_v41 = vadd.f32 %v1509_v39, %v1730_v38  ;;  %v1541_v42 = vpop.f32.mrb[8].mxu1  ;;  %v591_v43 = vpop.f32.mrb[9].mxu0 }
  0xf7   : > { %1174 = vst.msk [vmem:[%s1742_s27 + $0x9c] sm:$0xf] %vm1134_vm3, %v1436_v36  ;;  %1140 = vst.msk [vmem:[%s1742_s27 + $0x14] sm:$0xf] %vm1134_vm3, %v1402_v37  ;;  %v728_v44 = vadd.f32 %v1541_v42, %v1730_v38  ;;  %v592_v45 = vadd.f32 %v1730_v38, %v591_v43  ;;  %v719_v46 = vpop.f32.mrb[9].mxu1  ;;  %v1510_v47 = vpop.f32.mrb[10].mxu0 }
  0xf8   : > { %1172 = vst.msk [vmem:[%s1742_s27 + $0x94] sm:$0xf] %vm1134_vm3, %v1434_v40  ;;  %v824_v48 = vmax.f32 %v600_v41, 0.0  ;;  %v720_v49 = vadd.f32 %v1730_v38, %v719_v46  ;;  %v603_v50 = vadd.f32 %v1510_v47, %v1730_v38  ;;  %v1542_v51 = vpop.f32.mrb[10].mxu1  ;;  %v594_v52 = vpop.f32.mrb[11].mxu0 }
  0xf9   : > { %v856_v53 = vmax.f32 %v728_v44, 0.0  ;;  %v822_v54 = vmax.f32 %v592_v45, 0.0  ;;  %v731_v55 = vadd.f32 %v1542_v51, %v1730_v38  ;;  %v595_v56 = vadd.f32 %v1730_v38, %v594_v52  ;;  %v722_v57 = vpop.f32.mrb[11].mxu1 }
  0xfa   : > { %v1407_v58 = vpack.c.bf16 %v824_v48, %v824_v48  ;;  %v854_v59 = vmax.f32 %v720_v49, 0.0  ;;  %v825_v60 = vmax.f32 %v603_v50, 0.0  ;;  %v723_v61 = vadd.f32 %v1730_v38, %v722_v57 }
  0xfb   : > { %v1439_v62 = vpack.c.bf16 %v856_v53, %v856_v53  ;;  %v1405_v63 = vpack.c.bf16 %v822_v54, %v822_v54  ;;  %v857_v0 = vmax.f32 %v731_v55, 0.0  ;;  %v823_v1 = vmax.f32 %v595_v56, 0.0 }
  0xfc   : > { %1145 = vst.msk [vmem:[%s1742_s27 + $0x28] sm:$0xf] %vm1134_vm3, %v1407_v58  ;;  %v1437_v2 = vpack.c.bf16 %v854_v59, %v854_v59  ;;  %v1408_v3 = vpack.c.bf16 %v825_v60, %v825_v60  ;;  %v855_v4 = vmax.f32 %v723_v61, 0.0 }
  0xfd   : > { %1177 = vst.msk [vmem:[%s1742_s27 + $0xa8] sm:$0xf] %vm1134_vm3, %v1439_v62  ;;  %1143 = vst.msk [vmem:[%s1742_s27 + $0x20] sm:$0xf] %vm1134_vm3, %v1405_v63  ;;  %v1440_v5 = vpack.c.bf16 %v857_v0, %v857_v0  ;;  %v1406_v6 = vpack.c.bf16 %v823_v1, %v823_v1  ;;  %v1513_v7 = vpop.f32.mrb[12].mxu0 }
  0xfe   : > { %1175 = vst.msk [vmem:[%s1742_s27 + $0xa0] sm:$0xf] %vm1134_vm3, %v1437_v2  ;;  %1146 = vst.msk [vmem:[%s1742_s27 + $0x2c] sm:$0xf] %vm1134_vm3, %v1408_v3  ;;  %v1438_v8 = vpack.c.bf16 %v855_v4, %v855_v4  ;;  %v616_v9 = vadd.f32 %v1513_v7, %v1730_v38  ;;  %v1545_v10 = vpop.f32.mrb[12].mxu1  ;;  %v607_v11 = vpop.f32.mrb[13].mxu0 }
  0xff   : > { %1178 = vst.msk [vmem:[%s1742_s27 + $0xac] sm:$0xf] %vm1134_vm3, %v1440_v5  ;;  %1144 = vst.msk [vmem:[%s1742_s27 + $0x24] sm:$0xf] %vm1134_vm3, %v1406_v6  ;;  %v744_v12 = vadd.f32 %v1545_v10, %v1730_v38  ;;  %v608_v13 = vadd.f32 %v1730_v38, %v607_v11  ;;  %v735_v14 = vpop.f32.mrb[13].mxu1  ;;  %v1514_v15 = vpop.f32.mrb[14].mxu0 }
 0x100   : > { %1176 = vst.msk [vmem:[%s1742_s27 + $0xa4] sm:$0xf] %vm1134_vm3, %v1438_v8  ;;  %v828_v16 = vmax.f32 %v616_v9, 0.0  ;;  %v736_v17 = vadd.f32 %v1730_v38, %v735_v14  ;;  %v619_v18 = vadd.f32 %v1514_v15, %v1730_v38  ;;  %v1546_v19 = vpop.f32.mrb[14].mxu1  ;;  %v610_v20 = vpop.f32.mrb[15].mxu0 }
 0x101   : > { %v860_v21 = vmax.f32 %v744_v12, 0.0  ;;  %v826_v22 = vmax.f32 %v608_v13, 0.0  ;;  %v747_v23 = vadd.f32 %v1546_v19, %v1730_v38  ;;  %v611_v24 = vadd.f32 %v1730_v38, %v610_v20  ;;  %v738_v25 = vpop.f32.mrb[15].mxu1 }
 0x102   : > { %v1411_v26 = vpack.c.bf16 %v828_v16, %v828_v16  ;;  %v858_v27 = vmax.f32 %v736_v17, 0.0  ;;  %v829_v28 = vmax.f32 %v619_v18, 0.0  ;;  %v739_v29 = vadd.f32 %v1730_v38, %v738_v25 }
 0x103   : > { %v1443_v30 = vpack.c.bf16 %v860_v21, %v860_v21  ;;  %v1409_v31 = vpack.c.bf16 %v826_v22, %v826_v22  ;;  %v861_v32 = vmax.f32 %v747_v23, 0.0  ;;  %v827_v33 = vmax.f32 %v611_v24, 0.0 }
 0x104   : > { %1149 = vst.msk [vmem:[%s1742_s27 + $0x38] sm:$0xf] %vm1134_vm3, %v1411_v26  ;;  %v1441_v34 = vpack.c.bf16 %v858_v27, %v858_v27  ;;  %v1412_v35 = vpack.c.bf16 %v829_v28, %v829_v28  ;;  %v859_v36 = vmax.f32 %v739_v29, 0.0 }
 0x105   : > { %1181 = vst.msk [vmem:[%s1742_s27 + $0xb8] sm:$0xf] %vm1134_vm3, %v1443_v30  ;;  %1147 = vst.msk [vmem:[%s1742_s27 + $0x30] sm:$0xf] %vm1134_vm3, %v1409_v31  ;;  %v1444_v37 = vpack.c.bf16 %v861_v32, %v861_v32  ;;  %v1410_v39 = vpack.c.bf16 %v827_v33, %v827_v33  ;;  %v1517_v40 = vpop.f32.mrb[16].mxu0 }
 0x106   : > { %1179 = vst.msk [vmem:[%s1742_s27 + $0xb0] sm:$0xf] %vm1134_vm3, %v1441_v34  ;;  %1150 = vst.msk [vmem:[%s1742_s27 + $0x3c] sm:$0xf] %vm1134_vm3, %v1412_v35  ;;  %v1442_v41 = vpack.c.bf16 %v859_v36, %v859_v36  ;;  %v632_v42 = vadd.f32 %v1517_v40, %v1730_v38  ;;  %v1549_v43 = vpop.f32.mrb[16].mxu1  ;;  %v623_v44 = vpop.f32.mrb[17].mxu0 }
 0x107   : > { %1182 = vst.msk [vmem:[%s1742_s27 + $0xbc] sm:$0xf] %vm1134_vm3, %v1444_v37  ;;  %1148 = vst.msk [vmem:[%s1742_s27 + $0x34] sm:$0xf] %vm1134_vm3, %v1410_v39  ;;  %v760_v45 = vadd.f32 %v1549_v43, %v1730_v38  ;;  %v624_v46 = vadd.f32 %v1730_v38, %v623_v44  ;;  %v751_v47 = vpop.f32.mrb[17].mxu1  ;;  %v1518_v48 = vpop.f32.mrb[18].mxu0 }
 0x108   : > { %1180 = vst.msk [vmem:[%s1742_s27 + $0xb4] sm:$0xf] %vm1134_vm3, %v1442_v41  ;;  %v832_v49 = vmax.f32 %v632_v42, 0.0  ;;  %v752_v50 = vadd.f32 %v1730_v38, %v751_v47  ;;  %v635_v51 = vadd.f32 %v1518_v48, %v1730_v38  ;;  %v1550_v52 = vpop.f32.mrb[18].mxu1  ;;  %v626_v53 = vpop.f32.mrb[19].mxu0 }
 0x109   : > { %v864_v54 = vmax.f32 %v760_v45, 0.0  ;;  %v830_v55 = vmax.f32 %v624_v46, 0.0  ;;  %v763_v56 = vadd.f32 %v1550_v52, %v1730_v38  ;;  %v627_v57 = vadd.f32 %v1730_v38, %v626_v53  ;;  %v754_v58 = vpop.f32.mrb[19].mxu1 }
 0x10a   : > { %v1415_v59 = vpack.c.bf16 %v832_v49, %v832_v49  ;;  %v862_v60 = vmax.f32 %v752_v50, 0.0  ;;  %v833_v61 = vmax.f32 %v635_v51, 0.0  ;;  %v755_v62 = vadd.f32 %v1730_v38, %v754_v58 }
 0x10b   : > { %v1447_v63 = vpack.c.bf16 %v864_v54, %v864_v54  ;;  %v1413_v0 = vpack.c.bf16 %v830_v55, %v830_v55  ;;  %v865_v1 = vmax.f32 %v763_v56, 0.0  ;;  %v831_v2 = vmax.f32 %v627_v57, 0.0 }
 0x10c   : > { %1153 = vst.msk [vmem:[%s1742_s27 + $0x48] sm:$0xf] %vm1134_vm3, %v1415_v59  ;;  %v1445_v3 = vpack.c.bf16 %v862_v60, %v862_v60  ;;  %v1416_v4 = vpack.c.bf16 %v833_v61, %v833_v61  ;;  %v863_v5 = vmax.f32 %v755_v62, 0.0 }
 0x10d   : > { %1185 = vst.msk [vmem:[%s1742_s27 + $0xc8] sm:$0xf] %vm1134_vm3, %v1447_v63  ;;  %1151 = vst.msk [vmem:[%s1742_s27 + $0x40] sm:$0xf] %vm1134_vm3, %v1413_v0  ;;  %v1448_v6 = vpack.c.bf16 %v865_v1, %v865_v1  ;;  %v1414_v7 = vpack.c.bf16 %v831_v2, %v831_v2  ;;  %v1521_v8 = vpop.f32.mrb[20].mxu0 }
 0x10e   : > { %1183 = vst.msk [vmem:[%s1742_s27 + $0xc0] sm:$0xf] %vm1134_vm3, %v1445_v3  ;;  %1154 = vst.msk [vmem:[%s1742_s27 + $0x4c] sm:$0xf] %vm1134_vm3, %v1416_v4  ;;  %v1446_v9 = vpack.c.bf16 %v863_v5, %v863_v5  ;;  %v648_v10 = vadd.f32 %v1521_v8, %v1730_v38  ;;  %v1553_v11 = vpop.f32.mrb[20].mxu1  ;;  %v639_v12 = vpop.f32.mrb[21].mxu0 }
 0x10f   : > { %1186 = vst.msk [vmem:[%s1742_s27 + $0xcc] sm:$0xf] %vm1134_vm3, %v1448_v6  ;;  %1152 = vst.msk [vmem:[%s1742_s27 + $0x44] sm:$0xf] %vm1134_vm3, %v1414_v7  ;;  %v776_v13 = vadd.f32 %v1553_v11, %v1730_v38  ;;  %v640_v14 = vadd.f32 %v1730_v38, %v639_v12  ;;  %v767_v15 = vpop.f32.mrb[21].mxu1  ;;  %v1522_v16 = vpop.f32.mrb[22].mxu0 }
 0x110   : > { %1184 = vst.msk [vmem:[%s1742_s27 + $0xc4] sm:$0xf] %vm1134_vm3, %v1446_v9  ;;  %v836_v17 = vmax.f32 %v648_v10, 0.0  ;;  %v768_v18 = vadd.f32 %v1730_v38, %v767_v15  ;;  %v651_v19 = vadd.f32 %v1522_v16, %v1730_v38  ;;  %v1554_v20 = vpop.f32.mrb[22].mxu1  ;;  %v642_v21 = vpop.f32.mrb[23].mxu0 }
 0x111   : > { %v868_v22 = vmax.f32 %v776_v13, 0.0  ;;  %v834_v23 = vmax.f32 %v640_v14, 0.0  ;;  %v779_v24 = vadd.f32 %v1554_v20, %v1730_v38  ;;  %v643_v25 = vadd.f32 %v1730_v38, %v642_v21  ;;  %v770_v26 = vpop.f32.mrb[23].mxu1 }
 0x112   : > { %v1419_v27 = vpack.c.bf16 %v836_v17, %v836_v17  ;;  %v866_v28 = vmax.f32 %v768_v18, 0.0  ;;  %v837_v29 = vmax.f32 %v651_v19, 0.0  ;;  %v771_v30 = vadd.f32 %v1730_v38, %v770_v26 }
 0x113   : > { %v1451_v31 = vpack.c.bf16 %v868_v22, %v868_v22  ;;  %v1417_v32 = vpack.c.bf16 %v834_v23, %v834_v23  ;;  %v869_v33 = vmax.f32 %v779_v24, 0.0  ;;  %v835_v34 = vmax.f32 %v643_v25, 0.0 }
 0x114   : > { %1157 = vst.msk [vmem:[%s1742_s27 + $0x58] sm:$0xf] %vm1134_vm3, %v1419_v27  ;;  %v1449_v35 = vpack.c.bf16 %v866_v28, %v866_v28  ;;  %v1420_v36 = vpack.c.bf16 %v837_v29, %v837_v29  ;;  %v867_v37 = vmax.f32 %v771_v30, 0.0 }
 0x115   : > { %1189 = vst.msk [vmem:[%s1742_s27 + $0xd8] sm:$0xf] %vm1134_vm3, %v1451_v31  ;;  %1155 = vst.msk [vmem:[%s1742_s27 + $0x50] sm:$0xf] %vm1134_vm3, %v1417_v32  ;;  %v1452_v39 = vpack.c.bf16 %v869_v33, %v869_v33  ;;  %v1418_v40 = vpack.c.bf16 %v835_v34, %v835_v34  ;;  %v1525_v41 = vpop.f32.mrb[24].mxu0 }
 0x116   : > { %1187 = vst.msk [vmem:[%s1742_s27 + $0xd0] sm:$0xf] %vm1134_vm3, %v1449_v35  ;;  %1158 = vst.msk [vmem:[%s1742_s27 + $0x5c] sm:$0xf] %vm1134_vm3, %v1420_v36  ;;  %v1450_v42 = vpack.c.bf16 %v867_v37, %v867_v37  ;;  %v664_v43 = vadd.f32 %v1525_v41, %v1730_v38  ;;  %v1557_v44 = vpop.f32.mrb[24].mxu1  ;;  %v655_v45 = vpop.f32.mrb[25].mxu0 }
 0x117   : > { %1190 = vst.msk [vmem:[%s1742_s27 + $0xdc] sm:$0xf] %vm1134_vm3, %v1452_v39  ;;  %1156 = vst.msk [vmem:[%s1742_s27 + $0x54] sm:$0xf] %vm1134_vm3, %v1418_v40  ;;  %v792_v46 = vadd.f32 %v1557_v44, %v1730_v38  ;;  %v656_v47 = vadd.f32 %v1730_v38, %v655_v45  ;;  %v783_v48 = vpop.f32.mrb[25].mxu1  ;;  %v1526_v49 = vpop.f32.mrb[26].mxu0 }
 0x118   : > { %1188 = vst.msk [vmem:[%s1742_s27 + $0xd4] sm:$0xf] %vm1134_vm3, %v1450_v42  ;;  %v840_v50 = vmax.f32 %v664_v43, 0.0  ;;  %v784_v51 = vadd.f32 %v1730_v38, %v783_v48  ;;  %v667_v52 = vadd.f32 %v1526_v49, %v1730_v38  ;;  %v1558_v53 = vpop.f32.mrb[26].mxu1  ;;  %v658_v54 = vpop.f32.mrb[27].mxu0 }
 0x119   : > { %v872_v55 = vmax.f32 %v792_v46, 0.0  ;;  %v838_v56 = vmax.f32 %v656_v47, 0.0  ;;  %v795_v57 = vadd.f32 %v1558_v53, %v1730_v38  ;;  %v659_v58 = vadd.f32 %v1730_v38, %v658_v54  ;;  %v786_v59 = vpop.f32.mrb[27].mxu1 }
 0x11a   : > { %v1423_v60 = vpack.c.bf16 %v840_v50, %v840_v50  ;;  %v870_v61 = vmax.f32 %v784_v51, 0.0  ;;  %v841_v62 = vmax.f32 %v667_v52, 0.0  ;;  %v787_v63 = vadd.f32 %v1730_v38, %v786_v59 }
 0x11b   : > { %v1455_v0 = vpack.c.bf16 %v872_v55, %v872_v55  ;;  %v1421_v1 = vpack.c.bf16 %v838_v56, %v838_v56  ;;  %v873_v2 = vmax.f32 %v795_v57, 0.0  ;;  %v839_v3 = vmax.f32 %v659_v58, 0.0 }
 0x11c   : > { %1161 = vst.msk [vmem:[%s1742_s27 + $0x68] sm:$0xf] %vm1134_vm3, %v1423_v60  ;;  %v1453_v4 = vpack.c.bf16 %v870_v61, %v870_v61  ;;  %v1424_v5 = vpack.c.bf16 %v841_v62, %v841_v62  ;;  %v871_v6 = vmax.f32 %v787_v63, 0.0 }
 0x11d   : > { %1193 = vst.msk [vmem:[%s1742_s27 + $0xe8] sm:$0xf] %vm1134_vm3, %v1455_v0  ;;  %1159 = vst.msk [vmem:[%s1742_s27 + $0x60] sm:$0xf] %vm1134_vm3, %v1421_v1  ;;  %v1456_v7 = vpack.c.bf16 %v873_v2, %v873_v2  ;;  %v1422_v8 = vpack.c.bf16 %v839_v3, %v839_v3  ;;  %v1529_v9 = vpop.f32.mrb[28].mxu0 }
 0x11e   : > { %1191 = vst.msk [vmem:[%s1742_s27 + $0xe0] sm:$0xf] %vm1134_vm3, %v1453_v4  ;;  %1162 = vst.msk [vmem:[%s1742_s27 + $0x6c] sm:$0xf] %vm1134_vm3, %v1424_v5  ;;  %v1454_v10 = vpack.c.bf16 %v871_v6, %v871_v6  ;;  %v680_v11 = vadd.f32 %v1529_v9, %v1730_v38  ;;  %v1561_v12 = vpop.f32.mrb[28].mxu1  ;;  %v671_v13 = vpop.f32.mrb[29].mxu0 }
 0x11f   : > { %1194 = vst.msk [vmem:[%s1742_s27 + $0xec] sm:$0xf] %vm1134_vm3, %v1456_v7  ;;  %1160 = vst.msk [vmem:[%s1742_s27 + $0x64] sm:$0xf] %vm1134_vm3, %v1422_v8  ;;  %v808_v14 = vadd.f32 %v1561_v12, %v1730_v38  ;;  %v672_v15 = vadd.f32 %v1730_v38, %v671_v13  ;;  %v799_v16 = vpop.f32.mrb[29].mxu1  ;;  %v1530_v17 = vpop.f32.mrb[30].mxu0 }
 0x120   : > { %1192 = vst.msk [vmem:[%s1742_s27 + $0xe4] sm:$0xf] %vm1134_vm3, %v1454_v10  ;;  %v844_v18 = vmax.f32 %v680_v11, 0.0  ;;  %v800_v19 = vadd.f32 %v1730_v38, %v799_v16  ;;  %v683_v20 = vadd.f32 %v1530_v17, %v1730_v38  ;;  %v1562_v21 = vpop.f32.mrb[30].mxu1  ;;  %v674_v22 = vpop.f32.mrb[31].mxu0 }
 0x121   : > { %v876_v23 = vmax.f32 %v808_v14, 0.0  ;;  %v842_v24 = vmax.f32 %v672_v15, 0.0  ;;  %v811_v25 = vadd.f32 %v1562_v21, %v1730_v38  ;;  %v675_v26 = vadd.f32 %v1730_v38, %v674_v22  ;;  %v802_v27 = vpop.f32.mrb[31].mxu1 }
 0x122   : > { %v1427_v28 = vpack.c.bf16 %v844_v18, %v844_v18  ;;  %v874_v29 = vmax.f32 %v800_v19, 0.0  ;;  %v845_v30 = vmax.f32 %v683_v20, 0.0  ;;  %v803_v31 = vadd.f32 %v1730_v38, %v802_v27 }
 0x123   : > { %v1459_v32 = vpack.c.bf16 %v876_v23, %v876_v23  ;;  %v1425_v33 = vpack.c.bf16 %v842_v24, %v842_v24  ;;  %v877_v34 = vmax.f32 %v811_v25, 0.0  ;;  %v843_v35 = vmax.f32 %v675_v26, 0.0 }
 0x124   : > { %1165 = vst.msk [vmem:[%s1742_s27 + $0x78] sm:$0xf] %vm1134_vm3, %v1427_v28  ;;  %v1457_v36 = vpack.c.bf16 %v874_v29, %v874_v29  ;;  %v1428_v37 = vpack.c.bf16 %v845_v30, %v845_v30  ;;  %v875_v39 = vmax.f32 %v803_v31, 0.0 }
 0x125   : > { %1197 = vst.msk [vmem:[%s1742_s27 + $0xf8] sm:$0xf] %vm1134_vm3, %v1459_v32  ;;  %1163 = vst.msk [vmem:[%s1742_s27 + $0x70] sm:$0xf] %vm1134_vm3, %v1425_v33  ;;  %v1460_v40 = vpack.c.bf16 %v877_v34, %v877_v34  ;;  %v1426_v41 = vpack.c.bf16 %v843_v35, %v843_v35 }
 0x126   : > { %1195 = vst.msk [vmem:[%s1742_s27 + $0xf0] sm:$0xf] %vm1134_vm3, %v1457_v36  ;;  %1166 = vst.msk [vmem:[%s1742_s27 + $0x7c] sm:$0xf] %vm1134_vm3, %v1428_v37  ;;  %v1458_v38 = vpack.c.bf16 %v875_v39, %v875_v39 }
 0x127   : > { %1198 = vst.msk [vmem:[%s1742_s27 + $0xfc] sm:$0xf] %vm1134_vm3, %v1460_v40  ;;  %1164 = vst.msk [vmem:[%s1742_s27 + $0x74] sm:$0xf] %vm1134_vm3, %v1426_v41 }
 0x128   : > { %1196 = vst.msk [vmem:[%s1742_s27 + $0xf4] sm:$0xf] %vm1134_vm3, %v1458_v38 }
 0x129 PF: > { %s13_s12 = sadd.s32 1, %s1616_s12  }
 0x12a   : > { %p10_p4 = scmp.ge.s32.totalorder %s13_s12, 89  }
 0x12c   :  { %12 = sbr.rel (!%p10_p4) target bundleno = 1 (0x1), region = 62 }

</bundles_post_ra>
